<compile_context>
chip_gen: v5e
topology: v5e:2x2
jax: 0.10.0
libtpu: 0.0.40
codegen_flags: <defaults>
</compile_context>

<pallas_src>
import math
import functools

import jax
import jax.numpy as jnp
from jax.experimental import pallas as pl
from jax.experimental.pallas import tpu as pltpu

LN_EPS = 1e-5          # nn.LayerNorm default
_MASK_NEG = -1e30      # additive bias for padded KV columns (finite -> no NaN)


def _round_up(a, b):
    return (a + b - 1) // b * b


def _layernorm(x, gamma, beta):
    mu = jnp.mean(x, axis=-1, keepdims=True)
    var = jnp.mean((x - mu) ** 2, axis=-1, keepdims=True)
    return (x - mu) * jax.lax.rsqrt(var + LN_EPS) * gamma + beta


def _gelu_exact(x):
    # nn.GELU() default = exact (erf) formulation.
    return 0.5 * x * (1.0 + jax.lax.erf(x * (1.0 / math.sqrt(2.0))))


def _vmem_limit_bytes():
    """~56 MiB on v7x (64 MiB phys), ~100 MiB on v5e/v6e (128 MiB phys)."""
    try:
        cap = pltpu.get_tpu_info().vmem_capacity_bytes
    except Exception:
        cap = 64 * 1024 * 1024
    return int(max(32 * 1024 * 1024,
                   min(cap - 8 * 1024 * 1024, 100 * 1024 * 1024)))


# --------------------------------------------------------------------------
# Stage 1: LN1 + fused QKV projection (once per sequence row)
# --------------------------------------------------------------------------
def qkv_kernel(x_ref, wqkv_ref, bqkv_ref, ln1_g_ref, ln1_b_ref, qkv_ref):
    f32 = jnp.float32
    x = x_ref[0].astype(f32)                                   # (TQ, C)
    xn = _layernorm(x, ln1_g_ref[...], ln1_b_ref[...]).astype(jnp.bfloat16)
    qkv = jnp.dot(xn, wqkv_ref[...],
                  preferred_element_type=f32) + bqkv_ref[...]  # (TQ, 3C)
    qkv_ref[0] = qkv.astype(qkv_ref.dtype)


# --------------------------------------------------------------------------
# Stage 2: attention (at mk==0) + chunked MLP accumulation over the mk axis
# --------------------------------------------------------------------------
def block_kernel(
    x_ref, q_ref, k_ref, v_ref, kvmask_ref,
    proj_w_ref, proj_b_ref,
    fc1_w_ref, fc1_b_ref, fc2_w_ref, fc2_b_ref,
    ln2_g_ref, ln2_b_ref,
    o_ref,
    acc_ref, xn2_ref,
    *, heads, apply_mask,
):
    f32 = jnp.float32
    bf16 = jnp.bfloat16
    mk = pl.program_id(2)

    # ---- attention branch + init of the MLP accumulator (first mk step) ---
    @pl.when(mk == 0)
    def _attention_and_init():
        x_q = x_ref[0].astype(f32)          # (TQ, C)  residual stream (f32)
        q = q_ref[0]                        # (H, TQ, hd) bf16, scale pre-fused
        k = k_ref[0]                        # (H, N,  hd) bf16
        v = v_ref[0]                        # (H, N,  hd) bf16

        # scores via NT contraction, batched over heads (no transposes).
        s = jnp.einsum('hqd,hkd->hqk', q, k,
                       preferred_element_type=f32)             # (H, TQ, N)
        if apply_mask:
            s = s + kvmask_ref[...]         # (1, N): -1e30 on padded columns
        s = s - jnp.max(s, axis=-1, keepdims=True)
        p = jnp.exp(s)
        denom = jnp.sum(p, axis=-1, keepdims=True)              # (H, TQ, 1)

        # PV matmul on UNnormalized p, normalize afterwards (EUP reciprocal).
        ctx = jnp.einsum('hqk,hkd->hqd', p.astype(bf16), v,
                         preferred_element_type=f32)             # (H, TQ, hd)
        ctx = ctx * pl.reciprocal(denom, approx=True)

        # output projection, accumulated per head into a (TQ, C) f32 value
        # (avoids materializing an (H, TQ, C) intermediate).
        TQ, C = x_q.shape
        y = jnp.zeros((TQ, C), f32)
        for h in range(heads):               # static unroll over heads
            y = y + jnp.dot(ctx[h].astype(bf16), proj_w_ref[h],
                            preferred_element_type=f32)
        x1 = x_q + y + proj_b_ref[...]       # residual 1 (DropPath = identity)

        xn2_ref[...] = _layernorm(x1, ln2_g_ref[...],
                                  ln2_b_ref[...]).astype(bf16)
        acc_ref[...] = x1 + fc2_b_ref[...]   # residual-2 base + fc2 bias

    # ---- MLP chunk for this mk step (fc1/fc2 tiles streamed by pipeline) ---
    h1 = jnp.dot(xn2_ref[...], fc1_w_ref[...],
                 preferred_element_type=f32) + fc1_b_ref[...]    # (TQ, TM)
    h1 = _gelu_exact(h1).astype(bf16)
    acc_ref[...] += jnp.dot(h1, fc2_w_ref[...],
                            preferred_element_type=f32)

    @pl.when(mk == pl.num_programs(2) - 1)
    def _finalize():
        o_ref[0] = acc_ref[...].astype(o_ref.dtype)


# --------------------------------------------------------------------------
# Wrapper
# --------------------------------------------------------------------------
def block_forward(x, params, *, heads, tq=None, mlp_tile=None):
    B, N, C = x.shape
    H = heads
    assert C % H == 0
    hd = C // H
    scale = hd ** (-0.5)
    f32, bf16 = jnp.float32, jnp.bfloat16

    # sequence padded to a multiple of 128; q-tile never below 128.
    N_pad = max(_round_up(N, 128), 128)
    if tq is None:
        tq = 128                     # raiseable on v5e/v6e (more VMEM headroom)
    tq = min(tq, N_pad)
    assert N_pad % tq == 0

    M = params["fc1_w"].shape[1]
    if mlp_tile is None:
        mlp_tile = next((t for t in (512, 256, 128) if t <= M and M % t == 0), M)
    assert M % mlp_tile == 0

    vmem_limit = _vmem_limit_bytes()

    # ---- host-side weight prep: fused QKV, scale folded into Q, bf16 ------
    qkv_w = params["qkv_w"].astype(f32)                   # (C, 3C) (in, out)
    qkv_b = params["qkv_b"].reshape(1, 3 * C).astype(f32)
    wqkv = jnp.concatenate([qkv_w[:, :C] * scale, qkv_w[:, C:]], axis=1).astype(bf16)
    bqkv = jnp.concatenate([qkv_b[:, :C] * scale, qkv_b[:, C:]], axis=1).astype(f32)

    proj_w = params["proj_w"].reshape(H, hd, C).astype(bf16)   # head-major
    proj_b = params["proj_b"].reshape(1, C).astype(f32)
    fc1_w = params["fc1_w"].astype(bf16)                       # (C, M)
    fc1_b = params["fc1_b"].reshape(1, M).astype(f32)
    fc2_w = params["fc2_w"].astype(bf16)                       # (M, C)
    fc2_b = params["fc2_b"].reshape(1, C).astype(f32)
    ln1_g = params["ln1_g"].reshape(1, C).astype(f32)
    ln1_b = params["ln1_b"].reshape(1, C).astype(f32)
    ln2_g = params["ln2_g"].reshape(1, C).astype(f32)
    ln2_b = params["ln2_b"].reshape(1, C).astype(f32)

    # ---- pad x along the sequence dim --------------------------------------
    x_pad = jnp.pad(x, ((0, 0), (0, N_pad - N), (0, 0))) if N_pad != N else x
    x_pad_f32 = x_pad.astype(f32)       # residual stream (full precision)
    x_pad_bf16 = x_pad.astype(bf16)     # QKV-projection input (halved DMA)

    # ---- stage 1: LN1 + fused QKV projection (once per row) ---------------
    qkv_flat = pl.pallas_call(
        qkv_kernel,
        out_shape=jax.ShapeDtypeStruct((B, N_pad, 3 * C), bf16),
        grid_spec=pltpu.PrefetchScalarGridSpec(
            num_scalar_prefetch=0,
            grid=(B, N_pad // tq),
            in_specs=[
                pl.BlockSpec((1, tq, C), lambda b, ni: (b, ni, 0)),
                pl.BlockSpec((C, 3 * C), lambda b, ni: (0, 0)),
                pl.BlockSpec((1, 3 * C), lambda b, ni: (0, 0)),
                pl.BlockSpec((1, C), lambda b, ni: (0, 0)),
                pl.BlockSpec((1, C), lambda b, ni: (0, 0)),
            ],
            out_specs=pl.BlockSpec((1, tq, 3 * C), lambda b, ni: (b, ni, 0)),
        ),
        compiler_params=pltpu.CompilerParams(
            dimension_semantics=("parallel", "parallel"),
            vmem_limit_bytes=vmem_limit,
        ),
    )(x_pad_bf16, wqkv, bqkv, ln1_g, ln1_b)

    # head-major relayout (single XLA transpose, layout only):
    # (B, Npad, 3C) -> (3, B, H, Npad, hd)   [mirrors the torch permute]
    qkv_hm = qkv_flat.reshape(B, N_pad, 3, H, hd).transpose(2, 0, 3, 1, 4)
    q_hm, k_hm, v_hm = qkv_hm[0], qkv_hm[1], qkv_hm[2]

    # additive mask for padded KV columns
    kv_mask = jnp.where(jnp.arange(N_pad) < N, 0.0,
                        _MASK_NEG).astype(f32).reshape(1, N_pad)

    kernel = functools.partial(block_kernel, heads=H, apply_mask=(N_pad != N))
    grid = (B, N_pad // tq, M // mlp_tile)

    out_pad = pl.pallas_call(
        kernel,
        out_shape=jax.ShapeDtypeStruct((B, N_pad, C), x.dtype),
        grid_spec=pltpu.PrefetchScalarGridSpec(
            num_scalar_prefetch=0,
            grid=grid,
            in_specs=[
                pl.BlockSpec((1, tq, C), lambda b, qi, mk: (b, qi, 0)),        # x
                pl.BlockSpec((1, H, tq, hd), lambda b, qi, mk: (b, 0, qi, 0)), # q
                pl.BlockSpec((1, H, N_pad, hd), lambda b, qi, mk: (b, 0, 0, 0)),  # k
                pl.BlockSpec((1, H, N_pad, hd), lambda b, qi, mk: (b, 0, 0, 0)),  # v
                pl.BlockSpec((1, N_pad), lambda b, qi, mk: (0, 0)),            # kv mask
                pl.BlockSpec((H, hd, C), lambda b, qi, mk: (0, 0, 0)),         # proj_w
                pl.BlockSpec((1, C), lambda b, qi, mk: (0, 0)),                # proj_b
                pl.BlockSpec((C, mlp_tile), lambda b, qi, mk: (0, mk)),        # fc1_w
                pl.BlockSpec((1, mlp_tile), lambda b, qi, mk: (0, mk)),        # fc1_b
                pl.BlockSpec((mlp_tile, C), lambda b, qi, mk: (mk, 0)),        # fc2_w
                pl.BlockSpec((1, C), lambda b, qi, mk: (0, 0)),                # fc2_b
                pl.BlockSpec((1, C), lambda b, qi, mk: (0, 0)),                # ln2_g
                pl.BlockSpec((1, C), lambda b, qi, mk: (0, 0)),                # ln2_b
            ],
            out_specs=pl.BlockSpec((1, tq, C), lambda b, qi, mk: (b, qi, 0)),
            scratch_shapes=[
                pltpu.VMEM((tq, C), jnp.float32),   # MLP / residual accumulator
                pltpu.VMEM((tq, C), jnp.bfloat16),  # cached LN2 activations
            ],
        ),
        compiler_params=pltpu.CompilerParams(
            dimension_semantics=("parallel", "parallel", "arbitrary"),
            vmem_limit_bytes=vmem_limit,
        ),
    )(x_pad_f32, q_hm, k_hm, v_hm, kv_mask,
      proj_w, proj_b, fc1_w, fc1_b, fc2_w, fc2_b, ln2_g, ln2_b)

    return out_pad[:, :N, :] if N_pad != N else out_pad


# --------------------------------------------------------------------------
# Pure-JAX reference + param init + test
# --------------------------------------------------------------------------
def block_reference(x, params, *, heads):
    """Pure-JAX f32 reference matching PyTorch Block.forward (eval mode)."""
    B, N, C = x.shape
    hd = C // heads
    scale = hd ** (-0.5)

    xn = _layernorm(x, params["ln1_g"], params["ln1_b"])
    qkv = xn @ params["qkv_w"] + params["qkv_b"]           # (B, N, 3C)
    qkv = qkv.reshape(B, N, 3, heads, hd).transpose(2, 0, 3, 1, 4)
    q, k, v = qkv[0], qkv[1], qkv[2]                        # (B, H, N, hd)
    attn = (q @ jnp.swapaxes(k, -2, -1)) * scale
    attn = jax.nn.softmax(attn, axis=-1)
    y = (attn @ v).transpose(0, 2, 1, 3).reshape(B, N, C)
    y = y @ params["proj_w"] + params["proj_b"]
    x = x + y

    xn2 = _layernorm(x, params["ln2_g"], params["ln2_b"])
    h = _gelu_exact(xn2 @ params["fc1_w"] + params["fc1_b"])
    h = h @ params["fc2_w"] + params["fc2_b"]
    return x + h


def init_params(key, dim, heads, mlp_dim):
    ks = jax.random.split(key, 8)
    s = 0.02
    return {
        # linear weights stored as (in, out)  (== torch W.T)
        "qkv_w": s * jax.random.normal(ks[0], (dim, 3 * dim), jnp.float32),
        "qkv_b": s * jax.random.normal(ks[1], (1, 3 * dim), jnp.float32),
        "proj_w": s * jax.random.normal(ks[2], (dim, dim), jnp.float32),
        "proj_b": s * jax.random.normal(ks[3], (1, dim), jnp.float32),
        "fc1_w": s * jax.random.normal(ks[4], (dim, mlp_dim), jnp.float32),
        "fc1_b": s * jax.random.normal(ks[5], (1, mlp_dim), jnp.float32),
        "fc2_w": s * jax.random.normal(ks[6], (mlp_dim, dim), jnp.float32),
        "fc2_b": s * jax.random.normal(ks[7], (1, dim), jnp.float32),
        "ln1_g": jnp.ones((1, dim), jnp.float32),
        "ln1_b": jnp.zeros((1, dim), jnp.float32),
        "ln2_g": jnp.ones((1, dim), jnp.float32),
        "ln2_b": jnp.zeros((1, dim), jnp.float32),
    }


if __name__ == "__main__":
    B, N, dim, heads, mlp_dim = 2, 16, 32, 4, 64

    key = jax.random.PRNGKey(0)
    kx, kp = jax.random.split(key)
    x = jax.random.normal(kx, (B, N, dim), jnp.float32)
    params = init_params(kp, dim, heads, mlp_dim)

    out = block_forward(x, params, heads=heads)
    out = jax.block_until_ready(out)

    ref = block_reference(x, params, heads=heads)
    assert out.shape == (B, N, dim)
    # bf16 MXU operands + approx reciprocal => bf16-level tolerance.
    err = float(jnp.max(jnp.abs(out - ref)))
    assert jnp.allclose(out, ref, atol=2e-2, rtol=2e-2), f"mismatch vs reference: {err}"

    print("KERNEL_OK")
</pallas_src>

<mosaic_0001>
module attributes {stable_mosaic.version = 11 : i64} {
  func.func @qkv_kernel(%arg0: i32, %arg1: i32, %arg2: memref<1x128x32xbf16, #tpu.memory_space<vmem>>, %arg3: memref<32x96xbf16, #tpu.memory_space<vmem>>, %arg4: memref<1x96xf32, #tpu.memory_space<vmem>>, %arg5: memref<1x32xf32, #tpu.memory_space<vmem>>, %arg6: memref<1x32xf32, #tpu.memory_space<vmem>>, %arg7: memref<1x128x96xbf16, #tpu.memory_space<vmem>>) attributes {dimension_semantics = [#tpu.dimension_semantics<parallel>, #tpu.dimension_semantics<parallel>], iteration_bounds = array<i64: 2, 1>, scalar_prefetch = 0 : i64, scratch_operands = 0 : i64, tpu.core_type = #tpu.core_type<tc>, window_params = [{transform_indices = @transform_0, window_bounds = array<i64: 1, 128, 32>}, {pipeline_mode = #tpu.pipeline_mode<synchronous>, transform_indices = @transform_1, window_bounds = array<i64: 32, 96>}, {pipeline_mode = #tpu.pipeline_mode<synchronous>, transform_indices = @transform_2, window_bounds = array<i64: 1, 96>}, {pipeline_mode = #tpu.pipeline_mode<synchronous>, transform_indices = @transform_3, window_bounds = array<i64: 1, 32>}, {pipeline_mode = #tpu.pipeline_mode<synchronous>, transform_indices = @transform_4, window_bounds = array<i64: 1, 32>}, {transform_indices = @transform_5, window_bounds = array<i64: 1, 128, 96>}]} {
    %c0 = arith.constant 0 : index
    %c0_0 = arith.constant 0 : index
    %c0_1 = arith.constant 0 : index
    %0 = vector.load %arg2[%c0, %c0_0, %c0_1] : memref<1x128x32xbf16, #tpu.memory_space<vmem>>, vector<1x128x32xbf16>
    %1 = vector.shape_cast %0 : vector<1x128x32xbf16> to vector<128x32xbf16>
    %2 = arith.extf %1 : vector<128x32xbf16> to vector<128x32xf32>
    %c0_2 = arith.constant 0 : index
    %c0_3 = arith.constant 0 : index
    %3 = vector.load %arg5[%c0_2, %c0_3] : memref<1x32xf32, #tpu.memory_space<vmem>>, vector<1x32xf32>
    %c0_4 = arith.constant 0 : index
    %c0_5 = arith.constant 0 : index
    %4 = vector.load %arg6[%c0_4, %c0_5] : memref<1x32xf32, #tpu.memory_space<vmem>>, vector<1x32xf32>
    %cst = arith.constant dense<0.000000e+00> : vector<128xf32>
    %5 = vector.multi_reduction <add>, %2, %cst [1] : vector<128x32xf32> to vector<128xf32>
    %6 = vector.shape_cast %5 : vector<128xf32> to vector<128x1xf32>
    %cst_6 = arith.constant 3.200000e+01 : f32
    %7 = vector.broadcast %cst_6 : f32 to vector<128x1xf32>
    %8 = arith.divf %6, %7 : vector<128x1xf32>
    %9 = vector.broadcast %8 : vector<128x1xf32> to vector<128x32xf32>
    %10 = arith.subf %2, %9 : vector<128x32xf32>
    %11 = arith.mulf %10, %10 : vector<128x32xf32>
    %cst_7 = arith.constant dense<0.000000e+00> : vector<128xf32>
    %12 = vector.multi_reduction <add>, %11, %cst_7 [1] : vector<128x32xf32> to vector<128xf32>
    %13 = vector.shape_cast %12 : vector<128xf32> to vector<128x1xf32>
    %cst_8 = arith.constant 3.200000e+01 : f32
    %14 = vector.broadcast %cst_8 : f32 to vector<128x1xf32>
    %15 = arith.divf %13, %14 : vector<128x1xf32>
    %16 = vector.broadcast %8 : vector<128x1xf32> to vector<128x32xf32>
    %17 = arith.subf %2, %16 : vector<128x32xf32>
    %cst_9 = arith.constant 9.99999974E-6 : f32
    %18 = vector.broadcast %cst_9 : f32 to vector<128x1xf32>
    %19 = arith.addf %15, %18 : vector<128x1xf32>
    %20 = math.rsqrt %19 : vector<128x1xf32>
    %21 = vector.broadcast %20 : vector<128x1xf32> to vector<128x32xf32>
    %22 = arith.mulf %17, %21 : vector<128x32xf32>
    %23 = vector.broadcast %3 : vector<1x32xf32> to vector<128x32xf32>
    %24 = arith.mulf %22, %23 : vector<128x32xf32>
    %25 = vector.broadcast %4 : vector<1x32xf32> to vector<128x32xf32>
    %26 = arith.addf %24, %25 : vector<128x32xf32>
    %27 = arith.truncf %26 : vector<128x32xf32> to vector<128x32xbf16>
    %c0_10 = arith.constant 0 : index
    %c0_11 = arith.constant 0 : index
    %28 = vector.load %arg3[%c0_10, %c0_11] : memref<32x96xbf16, #tpu.memory_space<vmem>>, vector<32x96xbf16>
    %cst_12 = arith.constant dense<0.000000e+00> : vector<128x96xf32>
    %29 = tpu.matmul %27, %28, %cst_12 {dimension_numbers = #tpu.dot_dimension_numbers<[1], [0], [0], [1], [0, 0, 1, 1], [], []>} : vector<128x32xbf16>, vector<32x96xbf16>, vector<128x96xf32> -> vector<128x96xf32>
    %c0_13 = arith.constant 0 : index
    %c0_14 = arith.constant 0 : index
    %30 = vector.load %arg4[%c0_13, %c0_14] : memref<1x96xf32, #tpu.memory_space<vmem>>, vector<1x96xf32>
    %31 = vector.broadcast %30 : vector<1x96xf32> to vector<128x96xf32>
    %32 = arith.addf %29, %31 : vector<128x96xf32>
    %33 = arith.truncf %32 : vector<128x96xf32> to vector<128x96xbf16>
    %c0_15 = arith.constant 0 : index
    %c0_16 = arith.constant 0 : index
    %c0_17 = arith.constant 0 : index
    %34 = vector.load %arg7[%c0_15, %c0_16, %c0_17] : memref<1x128x96xbf16, #tpu.memory_space<vmem>>, vector<1x128x96xbf16>
    %35 = vector.shape_cast %34 : vector<1x128x96xbf16> to vector<128x96xbf16>
    %36 = vector.shape_cast %33 : vector<128x96xbf16> to vector<1x128x96xbf16>
    tpu.vector_store %arg7[%c0_15, %c0_16, %c0_17], %36 {strides = array<i32>} : memref<1x128x96xbf16, #tpu.memory_space<vmem>>, vector<1x128x96xbf16>,
    return
  }
  func.func @transform_0(%arg0: i32, %arg1: i32) -> (i32, i32, i32) {
    %c0_i32 = arith.constant 0 : i32
    %c0_i32_0 = arith.constant 0 : i32
    return %arg0, %arg1, %c0_i32 : i32, i32, i32
  }
  func.func @transform_1(%arg0: i32, %arg1: i32) -> (i32, i32) {
    %c0_i32 = arith.constant 0 : i32
    %c0_i32_0 = arith.constant 0 : i32
    %c0_i32_1 = arith.constant 0 : i32
    return %c0_i32, %c0_i32_0 : i32, i32
  }
  func.func @transform_2(%arg0: i32, %arg1: i32) -> (i32, i32) {
    %c0_i32 = arith.constant 0 : i32
    %c0_i32_0 = arith.constant 0 : i32
    %c0_i32_1 = arith.constant 0 : i32
    return %c0_i32, %c0_i32_0 : i32, i32
  }
  func.func @transform_3(%arg0: i32, %arg1: i32) -> (i32, i32) {
    %c0_i32 = arith.constant 0 : i32
    %c0_i32_0 = arith.constant 0 : i32
    %c0_i32_1 = arith.constant 0 : i32
    return %c0_i32, %c0_i32_0 : i32, i32
  }
  func.func @transform_4(%arg0: i32, %arg1: i32) -> (i32, i32) {
    %c0_i32 = arith.constant 0 : i32
    %c0_i32_0 = arith.constant 0 : i32
    %c0_i32_1 = arith.constant 0 : i32
    return %c0_i32, %c0_i32_0 : i32, i32
  }
  func.func @transform_5(%arg0: i32, %arg1: i32) -> (i32, i32, i32) {
    %c0_i32 = arith.constant 0 : i32
    %c0_i32_0 = arith.constant 0 : i32
    return %arg0, %arg1, %c0_i32 : i32, i32, i32
  }
}

</mosaic_0001>

<bundles_post_ra>
// kernel: tpu_custom_call.1
= control target key start
LH: loop header
LB: loop body
LE: loop exit
PB: predicated region body
PF: predicated region fallthrough
CT: control target
= control target key end

     0   :  { %s1111_s18 = smov 0   ;;  %s1113_s19 = smov 0   ;;  %s1757_s0 = inlined_call_operand.vmem [shape: bf16[2,128,32], index: 0, kind: input, shape index: {}]   ;;  %s1758_s1 = inlined_call_operand.vmem [shape: bf16[32,96], index: 1, kind: input, shape index: {}]   ;;  %s1759_s2 = inlined_call_operand.vmem [shape: f32[1,96], index: 2, kind: input, shape index: {}]   ;;  %s1760_s3 = inlined_call_operand.vmem [shape: f32[1,32], index: 3, kind: input, shape index: {}]   ;;  %s1761_s4 = inlined_call_operand.vmem [shape: f32[1,32], index: 4, kind: input, shape index: {}]   ;;  %s1762_s5 = inlined_call_operand.vmem [shape: bf16[2,128,96], index: 5, kind: output, shape index: {}]  }
   0x1   :  { %s1115_s20 = smov 0  }
   0x2 LB: > { %s27_s21 = sadd.s32 1, %s1074_s19  ;;  %p922_p0 = scmp.ge.s32.totalorder %s1078_s20, 1  ;;  %s1078_s20 = sphi %s1115_s20, %s15_s20   ;;  %s1074_s19 = sphi %s1113_s19, %s1782_s19   ;;  %s1070_s18 = sphi %s1111_s18, %s1781_s18  }
   0x3   : > { %p29_p1 = scmp.ge.s32.totalorder %s27_s21, 2  ;;  %p208_p2 = scmp.lt.s32.totalorder %s1078_s20, 3 }
   0x5   : > { %s1784_s21 = smov (%p29_p1, %s27_s21), 0  ;;  %p209_p3 = pnand %p922_p0, %p208_p2 }
   0x6   : > { %p245_p4 = scmp.lt.s32.totalorder (!%p209_p3), %s1070_s18, 1 }
   0x7   : > { %212 = sbr.rel (%p209_p3) target bundleno = 474 (0x1da), region = 40 }
   0xc   : > { %s1786_s18 = smov (!%p245_p4, %s1070_s18), 1  ;;  %vm299_vm0 = vcmask 261120   ;;  %v1080_v40 = vmov 32.0  }
   0xd   : > { %s945_s22 = sshll.u32 %s1786_s18, 6  ;;  %1022 = vrcp.f32 %v1080_v40 }
   0xe   : > { %s1137_s25 = scalar_lea.vmem %s1757_s0, %s945_s22  ;;  %s1714_s13 = scalar_lea.vmem %s1762_s5, %s945_s22 }
   0xf   : > { %v1140_v0 = vld [vmem:[%s1137_s25 + $0x30] sm:$0xff]   ;;  %v1143_v1 = vld [vmem:[%s1137_s25 + $0x20] sm:$0xff]   ;;  %v1176_v16 = vld [vmem:[%s1137_s25 + $0x28] sm:$0xff]  }
  0x10   : > { %v1146_v2 = vld [vmem:[%s1137_s25] sm:$0xff]   ;;  %v975_v3 = vunpack.c.l.bf16 %v1140_v0  ;;  %v967_v4 = vunpack.c.l.bf16 %v1143_v1  ;;  %v976_v9 = vunpack.c.h.bf16 %v1140_v0  ;;  %v968_v10 = vunpack.c.h.bf16 %v1143_v1  ;;  %v1173_v15 = vld [vmem:[%s1137_s25 + $0x10] sm:$0xff]   ;;  %v1191_v23 = vld [vmem:[%s1137_s25 + $0x38] sm:$0xff]  }
  0x11   : > { %v951_v5 = vunpack.c.l.bf16 %v1146_v2  ;;  %v952_v11 = vunpack.c.h.bf16 %v1146_v2  ;;  %v959_v17 = vunpack.c.l.bf16 %v1173_v15  ;;  %v960_v18 = vunpack.c.h.bf16 %v1173_v15  ;;  %v1206_v30 = vld [vmem:[%s1137_s25 + $0x8] sm:$0xff]   ;;  %v1209_v31 = vld [vmem:[%s1137_s25 + $0x18] sm:$0xff]  }
  0x12   : > { %v336_v6 = vsel %vm299_vm0, %v975_v3, 0.0  ;;  %v324_v7 = vsel %vm299_vm0, %v967_v4, 0.0  ;;  %v339_v12 = vsel %vm299_vm0, %v976_v9, 0.0  ;;  %v327_v13 = vsel %vm299_vm0, %v968_v10, 0.0 }
  0x13   : > { %v300_v8 = vsel %vm299_vm0, %v951_v5, 0.0  ;;  %337 = vadd.xlane.f32.xlu1 %v336_v6  ;;  %325 = vadd.xlane.f32.xlu0 %v324_v7  ;;  %v303_v14 = vsel %vm299_vm0, %v952_v11, 0.0  ;;  %v971_v19 = vunpack.c.l.bf16 %v1176_v16  ;;  %v312_v20 = vsel %vm299_vm0, %v959_v17, 0.0  ;;  %v1023_v41 = vpop.eup %1022 }
  0x14   : > { %301 = vadd.xlane.f32.xlu2 %v300_v8  ;;  %v315_v21 = vsel %vm299_vm0, %v960_v18, 0.0  ;;  %v972_v24 = vunpack.c.h.bf16 %v1176_v16  ;;  %v979_v25 = vunpack.c.l.bf16 %v1191_v23  ;;  %v980_v26 = vunpack.c.h.bf16 %v1191_v23 }
  0x15   : > { %v330_v22 = vsel %vm299_vm0, %v971_v19, 0.0  ;;  %v955_v32 = vunpack.c.l.bf16 %v1206_v30  ;;  %v956_v33 = vunpack.c.h.bf16 %v1206_v30  ;;  %v963_v34 = vunpack.c.l.bf16 %v1209_v31 }
  0x16   : > { %v333_v27 = vsel %vm299_vm0, %v972_v24, 0.0  ;;  %v342_v28 = vsel %vm299_vm0, %v979_v25, 0.0  ;;  %v345_v29 = vsel %vm299_vm0, %v980_v26, 0.0  ;;  %v964_v38 = vunpack.c.h.bf16 %v1209_v31  ;;  %v948_v31 = vld [vmem:[%s1758_s1 + $0x8] sm:$0xff] }
  0x17   : > { %v306_v35 = vsel %vm299_vm0, %v955_v32, 0.0  ;;  %v309_v36 = vsel %vm299_vm0, %v956_v33, 0.0  ;;  %v318_v37 = vsel %vm299_vm0, %v963_v34, 0.0  ;;  %v349_v42 = vmul.f32 32.0, %v1023_v41  ;;  %989 = vmatpush.bf16.msra.mxu2 %v948_v31  ;;  %990 = vmatpush.bf16.msra.mxu3 %v948_v31 }
  0x18   : > { %v321_v39 = vsel %vm299_vm0, %v964_v38, 0.0  ;;  %vm353_vm1 = vweird.f32 %v1023_v41  ;;  %755 = vmatpush.bf16.msra.mxu0 %v948_v31  ;;  %988 = vmatpush.bf16.msra.mxu1 %v948_v31 }
  0x19   : > { %v350_v43 = vsub.f32 1.0, %v349_v42 }
  0x1b   : > { %340 = vadd.xlane.f32.xlu1 %v339_v12  ;;  %328 = vadd.xlane.f32.xlu0 %v327_v13  ;;  %v351_v44 = vmul.f32 %v1023_v41, %v350_v43 }
  0x1c   : > { %304 = vadd.xlane.f32.xlu2 %v303_v14 }
  0x1d   : > { %v352_v45 = vadd.f32 %v1023_v41, %v351_v44 }
  0x1f   : > { %v1227_v46 = vsel %vm353_vm1, %v1023_v41, %v352_v45 }
  0x23   : > { %313 = vadd.xlane.f32.xlu0 %v312_v20  ;;  %316 = vadd.xlane.f32.xlu1 %v315_v21 }
  0x24   : > { %331 = vadd.xlane.f32.xlu2 %v330_v22 }
  0x2b   : > { %334 = vadd.xlane.f32.xlu0 %v333_v27  ;;  %343 = vadd.xlane.f32.xlu1 %v342_v28 }
  0x2c   : > { %346 = vadd.xlane.f32.xlu2 %v345_v29 }
  0x33   : > { %307 = vadd.xlane.f32.xlu0 %v306_v35  ;;  %310 = vadd.xlane.f32.xlu1 %v309_v36 }
  0x34   : > { %319 = vadd.xlane.f32.xlu2 %v318_v37 }
  0x3b   : > { %322 = vadd.xlane.f32.xlu0 %v321_v39 }
  0x86   : > { %v338_v47 = vpop.xlane.xlu1 %337  ;;  %v326_v48 = vpop.xlane.xlu0 %325 }
  0x87   : > { %v367_v49 = vmul.f32 %v1227_v46, %v338_v47  ;;  %v363_v50 = vmul.f32 %v1227_v46, %v326_v48  ;;  %v302_v51 = vpop.xlane.xlu2 %301 }
  0x89   : > { %v1233_v52 = vsub.f32 %v975_v3, %v367_v49  ;;  %v1237_v53 = vsub.f32 %v967_v4, %v363_v50  ;;  %v355_v3 = vmul.f32 %v1227_v46, %v302_v51 }
  0x8b   : > { %v395_v54 = vmul.f32 %v1237_v53, %v1237_v53  ;;  %v399_v55 = vmul.f32 %v1233_v52, %v1233_v52  ;;  %v1269_v0 = vsub.f32 %v951_v5, %v355_v3 }
  0x8d   : > { %v427_v56 = vsel %vm299_vm0, %v395_v54, 0.0  ;;  %v439_v57 = vsel %vm299_vm0, %v399_v55, 0.0  ;;  %v387_v27 = vmul.f32 %v1269_v0, %v1269_v0 }
  0x8e   : > { %v341_v58 = vpop.xlane.xlu1 %340  ;;  %v329_v59 = vpop.xlane.xlu0 %328  ;;  %428 = vadd.xlane.f32.xlu1 %v427_v56  ;;  %440 = vadd.xlane.f32.xlu0 %v439_v57 }
  0x8f   : > { %v368_v60 = vmul.f32 %v1227_v46, %v341_v58  ;;  %v364_v61 = vmul.f32 %v1227_v46, %v329_v59  ;;  %v305_v62 = vpop.xlane.xlu2 %304  ;;  %v403_v37 = vsel %vm299_vm0, %v387_v27, 0.0 }
  0x90   : > { %v356_v63 = vmul.f32 %v1227_v46, %v305_v62 }
  0x91   : > { %v1251_v4 = vsub.f32 %v976_v9, %v368_v60  ;;  %v1255_v6 = vsub.f32 %v968_v10, %v364_v61 }
  0x92   : > { %v1259_v7 = vsub.f32 %v952_v11, %v356_v63 }
  0x93   : > { %v400_v8 = vmul.f32 %v1251_v4, %v1251_v4  ;;  %v396_v12 = vmul.f32 %v1255_v6, %v1255_v6 }
  0x94   : > { %v388_v13 = vmul.f32 %v1259_v7, %v1259_v7 }
  0x95   : > { %v442_v1 = vsel %vm299_vm0, %v400_v8, 0.0  ;;  %v430_v9 = vsel %vm299_vm0, %v396_v12, 0.0 }
  0x96   : > { %v314_v10 = vpop.xlane.xlu0 %313  ;;  %443 = vadd.xlane.f32.xlu1 %v442_v1  ;;  %431 = vadd.xlane.f32.xlu2 %v430_v9  ;;  %v406_v11 = vsel %vm299_vm0, %v388_v13, 0.0  ;;  %v317_v14 = vpop.xlane.xlu1 %316 }
  0x97   : > { %v359_v20 = vmul.f32 %v1227_v46, %v314_v10  ;;  %407 = vadd.xlane.f32.xlu0 %v406_v11  ;;  %v332_v21 = vpop.xlane.xlu2 %331  ;;  %v360_v22 = vmul.f32 %v1227_v46, %v317_v14 }
  0x98   : > { %v365_v2 = vmul.f32 %v1227_v46, %v332_v21 }
  0x99   : > { %v1279_v5 = vsub.f32 %v959_v17, %v359_v20  ;;  %v1289_v29 = vsub.f32 %v960_v18, %v360_v22 }
  0x9a   : > { %v1285_v28 = vsub.f32 %v971_v19, %v365_v2 }
  0x9b   : > { %v391_v35 = vmul.f32 %v1279_v5, %v1279_v5  ;;  %v392_v42 = vmul.f32 %v1289_v29, %v1289_v29 }
  0x9c   : > { %v397_v36 = vmul.f32 %v1285_v28, %v1285_v28 }
  0x9d   : > { %v415_v17 = vsel %vm299_vm0, %v391_v35, 0.0  ;;  %v418_v49 = vsel %vm299_vm0, %v392_v42, 0.0 }
  0x9e   : > { %v335_v39 = vpop.xlane.xlu0 %334  ;;  %416 = vadd.xlane.f32.xlu1 %v415_v17  ;;  %404 = vadd.xlane.f32.xlu2 %v403_v37  ;;  %v433_v19 = vsel %vm299_vm0, %v397_v36, 0.0  ;;  %v344_v40 = vpop.xlane.xlu1 %343  ;;  %v947_v36 = vld [vmem:[%s1758_s1] sm:$0xff] }
  0x9f   : > { %v366_v15 = vmul.f32 %v1227_v46, %v335_v39  ;;  %434 = vadd.xlane.f32.xlu0 %v433_v19  ;;  %v347_v18 = vpop.xlane.xlu2 %346  ;;  %v369_v41 = vmul.f32 %v1227_v46, %v344_v40  ;;  %992 = vmatpush.bf16.msra.mxu2 %v947_v36 }
  0xa0   : > { %v370_v43 = vmul.f32 %v1227_v46, %v347_v18  ;;  %993 = vmatpush.bf16.msra.mxu3 %v947_v36  ;;  %756 = vmatpush.bf16.msra.mxu0 %v947_v36 }
  0xa1   : > { %v1305_v44 = vsub.f32 %v972_v24, %v366_v15  ;;  %v1313_v47 = vsub.f32 %v979_v25, %v369_v41  ;;  %991 = vmatpush.bf16.msra.mxu1 %v947_v36 }
  0xa2   : > { %v1309_v45 = vsub.f32 %v980_v26, %v370_v43 }
  0xa3   : > { %v398_v48 = vmul.f32 %v1305_v44, %v1305_v44  ;;  %v401_v55 = vmul.f32 %v1313_v47, %v1313_v47 }
  0xa4   : > { %v402_v50 = vmul.f32 %v1309_v45, %v1309_v45 }
  0xa5   : > { %v436_v16 = vsel %vm299_vm0, %v398_v48, 0.0  ;;  %v445_v61 = vsel %vm299_vm0, %v401_v55, 0.0 }
  0xa6   : > { %437 = vadd.xlane.f32.xlu1 %v436_v16  ;;  %v308_v24 = vpop.xlane.xlu0 %307  ;;  %419 = vadd.xlane.f32.xlu2 %v418_v49  ;;  %v448_v26 = vsel %vm299_vm0, %v402_v50, 0.0  ;;  %v311_v51 = vpop.xlane.xlu1 %310 }
  0xa7   : > { %v357_v23 = vmul.f32 %v1227_v46, %v308_v24  ;;  %449 = vadd.xlane.f32.xlu0 %v448_v26  ;;  %v320_v25 = vpop.xlane.xlu2 %319  ;;  %v358_v54 = vmul.f32 %v1227_v46, %v311_v51 }
  0xa8   : > { %v361_v56 = vmul.f32 %v1227_v46, %v320_v25 }
  0xa9   : > { %v1329_v57 = vsub.f32 %v955_v32, %v357_v23  ;;  %v1337_v59 = vsub.f32 %v956_v33, %v358_v54 }
  0xaa   : > { %v1333_v58 = vsub.f32 %v963_v34, %v361_v56 }
  0xab   : > { %v389_v60 = vmul.f32 %v1329_v57, %v1329_v57  ;;  %v390_v30 = vmul.f32 %v1337_v59, %v1337_v59 }
  0xac   : > { %v393_v62 = vmul.f32 %v1333_v58, %v1333_v58 }
  0xad   : > { %v409_v63 = vsel %vm299_vm0, %v389_v60, 0.0  ;;  %v412_v12 = vsel %vm299_vm0, %v390_v30, 0.0 }
  0xae   : > { %410 = vadd.xlane.f32.xlu1 %v409_v63  ;;  %v323_v32 = vpop.xlane.xlu0 %322  ;;  %446 = vadd.xlane.f32.xlu2 %v445_v61  ;;  %v421_v34 = vsel %vm299_vm0, %v393_v62, 0.0 }
  0xaf   : > { %v362_v3 = vmul.f32 %v1227_v46, %v323_v32  ;;  %422 = vadd.xlane.f32.xlu0 %v421_v34 }
  0xb1   : > { %v1351_v33 = vsub.f32 %v964_v38, %v362_v3 }
  0xb3   : > { %v394_v8 = vmul.f32 %v1351_v33, %v1351_v33 }
  0xb5   : > { %v424_v13 = vsel %vm299_vm0, %v394_v8, 0.0 }
  0xb6   : > { %425 = vadd.xlane.f32.xlu1 %v424_v13  ;;  %413 = vadd.xlane.f32.xlu2 %v412_v12 }
 0x101   : > { %v429_v1 = vpop.xlane.xlu1 %428  ;;  %v441_v9 = vpop.xlane.xlu0 %440 }
 0x102   : > { %v459_v10 = vmul.f32 %v429_v1, %v1227_v46  ;;  %v463_v11 = vmul.f32 %v441_v9, %v1227_v46 }
 0x104   : > { %v475_v14 = vadd.f32 1e-05, %v459_v10  ;;  %v479_v20 = vadd.f32 1e-05, %v463_v11 }
 0x106   : > { %1024 = vrsqrt.f32 %v475_v14  ;;  %vm569_vm4 = vweird.f32 %v475_v14  ;;  %vm609_vm6 = vweird.f32 %v479_v20 }
 0x107   : > { %1026 = vrsqrt.f32 %v479_v20 }
 0x109   : > { %v444_v38 = vpop.xlane.xlu1 %443  ;;  %v432_v21 = vpop.xlane.xlu2 %431 }
 0x10a   : > { %v464_v22 = vmul.f32 %v444_v38, %v1227_v46  ;;  %v408_v2 = vpop.xlane.xlu0 %407  ;;  %v460_v27 = vmul.f32 %v432_v21, %v1227_v46 }
 0x10b   : > { %v452_v35 = vmul.f32 %v408_v2, %v1227_v46 }
 0x10c   : > { %v1368_v17 = vpop.eup %1024  ;;  %v1370_v37 = vadd.f32 1e-05, %v464_v22  ;;  %v1372_v39 = vadd.f32 1e-05, %v460_v27 }
 0x10d   : > { %v1374_v19 = vpop.eup %1026  ;;  %v564_v40 = vmul.f32 %v1368_v17, %v475_v14  ;;  %v1377_v15 = vadd.f32 1e-05, %v452_v35  ;;  %vm570_vm2 = vweird.f32 %v1368_v17 }
 0x10e   : > { %v604_v18 = vmul.f32 %v1374_v19, %v479_v20  ;;  %1028 = vrsqrt.f32 %v1370_v37  ;;  %vm610_vm3 = vweird.f32 %v1374_v19  ;;  %vm1411_vm5 = vmor %vm569_vm4, %vm570_vm2  ;;  %vm619_vm8 = vweird.f32 %v1370_v37 }
 0x10f   : > { %v565_v41 = vmul.f32 %v1368_v17, %v564_v40  ;;  %1030 = vrsqrt.f32 %v1377_v15  ;;  %vm1418_vm7 = vmor %vm609_vm6, %vm610_vm3  ;;  %vm499_vm9 = vweird.f32 %v1377_v15  ;;  %vm579_vm11 = vweird.f32 %v1372_v39 }
 0x110   : > { %v605_v42 = vmul.f32 %v1374_v19, %v604_v18  ;;  %1032 = vrsqrt.f32 %v1372_v39 }
 0x111   : > { %v566_v43 = vmul.f32 0.5, %v565_v41  ;;  %v417_v48 = vpop.xlane.xlu1 %416  ;;  %v405_v49 = vpop.xlane.xlu2 %404 }
 0x112   : > { %v606_v50 = vmul.f32 0.5, %v605_v42  ;;  %v455_v16 = vmul.f32 %v417_v48, %v1227_v46  ;;  %v435_v24 = vpop.xlane.xlu0 %434  ;;  %v451_v26 = vmul.f32 %v405_v49, %v1227_v46 }
 0x113   : > { %v567_v51 = vsub.f32 1.5, %v566_v43  ;;  %v461_v23 = vmul.f32 %v435_v24, %v1227_v46  ;;  %v1447_v43 = vld [vmem:[%s1760_s3] ss:$0 sm:$0xff] }
 0x114   : > { %v1388_v25 = vpop.eup %1028  ;;  %v607_v54 = vsub.f32 1.5, %v606_v50  ;;  %v1391_v55 = vadd.f32 1e-05, %v455_v16  ;;  %v1400_v62 = vadd.f32 1e-05, %v451_v26 }
 0x115   : > { %v1393_v56 = vpop.eup %1030  ;;  %v614_v60 = vmul.f32 %v1388_v25, %v1370_v37  ;;  %v1398_v61 = vadd.f32 1e-05, %v461_v23  ;;  %v568_v32 = vmul.f32 %v1368_v17, %v567_v51  ;;  %vm620_vm12 = vweird.f32 %v1388_v25 }
 0x116   : > { %v1033_v63 = vpop.eup %1032  ;;  %v608_v34 = vmul.f32 %v1374_v19, %v607_v54  ;;  %v494_v3 = vmul.f32 %v1393_v56, %v1377_v15  ;;  %1034 = vrsqrt.f32 %v1391_v55  ;;  %vm500_vm14 = vweird.f32 %v1393_v56  ;;  %vm1481_vm2 = vmor %vm619_vm8, %vm620_vm12 }
 0x117   : > { %v615_v30 = vmul.f32 %v1388_v25, %v614_v60  ;;  %v574_v8 = vmul.f32 %v1033_v63, %v1372_v39  ;;  %1036 = vrsqrt.f32 %v1398_v61  ;;  %v572_v31 = vsel %vm1411_vm5, %v1368_v17, %v568_v32  ;;  %vm1503_vm5 = vmor %vm499_vm9, %vm500_vm14 }
 0x118   : > { %v495_v13 = vmul.f32 %v1393_v56, %v494_v3  ;;  %v612_v20 = vsel %vm1418_vm7, %v1374_v19, %v608_v34  ;;  %1038 = vrsqrt.f32 %v1400_v62  ;;  %vm580_vm10 = vweird.f32 %v1033_v63 }
 0x119   : > { %v616_v9 = vmul.f32 0.5, %v615_v30  ;;  %v575_v10 = vmul.f32 %v1033_v63, %v574_v8  ;;  %v438_v11 = vpop.xlane.xlu1 %437  ;;  %v420_v14 = vpop.xlane.xlu2 %419  ;;  %v651_v18 = vmul.f32 %v572_v31, %v1237_v53  ;;  %v655_v41 = vmul.f32 %v612_v20, %v1233_v52  ;;  %vm581_vm13 = vmor %vm579_vm11, %vm580_vm10 }
 0x11a   : > { %v450_v38 = vpop.xlane.xlu0 %449  ;;  %v496_v21 = vmul.f32 0.5, %v495_v13  ;;  %v462_v2 = vmul.f32 %v438_v11, %v1227_v46  ;;  %v456_v17 = vmul.f32 %v420_v14, %v1227_v46  ;;  %vm529_vm15 = vweird.f32 %v1391_v55 }
 0x11b   : > { %v576_v22 = vmul.f32 0.5, %v575_v10  ;;  %v466_v27 = vmul.f32 %v450_v38, %v1227_v46  ;;  %v617_v36 = vsub.f32 1.5, %v616_v9  ;;  %vm589_vm1 = vweird.f32 %v1398_v61 }
 0x11c   : > { %v1432_v35 = vpop.eup %1034  ;;  %v1442_v42 = vadd.f32 1e-05, %v462_v2  ;;  %v497_v49 = vsub.f32 1.5, %v496_v21  ;;  %v1461_v26 = vadd.f32 1e-05, %v456_v17  ;;  %v670_v30 = vmul.f32 %v1447_v43, %v651_v18 }
 0x11d   : > { %v577_v40 = vsub.f32 1.5, %v576_v22  ;;  %v524_v19 = vmul.f32 %v1432_v35, %v1391_v55  ;;  %v1449_v48 = vpop.eup %1036  ;;  %v1452_v24 = vadd.f32 1e-05, %v466_v27  ;;  %v618_v52 = vmul.f32 %v1388_v25, %v617_v36 }
 0x11e   : > { %v1454_v53 = vpop.eup %1038  ;;  %v584_v39 = vmul.f32 %v1449_v48, %v1398_v61  ;;  %1040 = vrsqrt.f32 %v1442_v42  ;;  %v1486_v8 = vmul.f32 %v1393_v56, %v497_v49  ;;  %vm489_vm3 = vweird.f32 %v1400_v62 }
 0x11f   : > { %v578_v50 = vmul.f32 %v1033_v63, %v577_v40  ;;  %v525_v16 = vmul.f32 %v1432_v35, %v524_v19  ;;  %v484_v54 = vmul.f32 %v1454_v53, %v1400_v62  ;;  %1042 = vrsqrt.f32 %v1452_v24 }
 0x120   : > { %v585_v32 = vmul.f32 %v1449_v48, %v584_v39  ;;  %v674_v1 = vmul.f32 %v1447_v43, %v655_v41  ;;  %v622_v37 = vsel %vm1481_vm2, %v1388_v25, %v618_v52  ;;  %1044 = vrsqrt.f32 %v1461_v26 }
 0x121   : > { %v582_v51 = vsel %vm581_vm13, %v1033_v63, %v578_v50  ;;  %v526_v23 = vmul.f32 0.5, %v525_v16  ;;  %v411_v34 = vpop.xlane.xlu1 %410  ;;  %v1475_v63 = vld [vmem:[%s1761_s4] ss:$0 sm:$0xff]  ;;  %v485_v12 = vmul.f32 %v1454_v53, %v484_v54  ;;  %v447_v13 = vpop.xlane.xlu2 %446  ;;  %vm530_vm4 = vweird.f32 %v1432_v35 }
 0x122   : > { %v652_v60 = vmul.f32 %v582_v51, %v1255_v6  ;;  %v423_v3 = vpop.xlane.xlu0 %422  ;;  %v586_v10 = vmul.f32 0.5, %v585_v32  ;;  %v453_v14 = vmul.f32 %v411_v34, %v1227_v46  ;;  %v465_v38 = vmul.f32 %v447_v13, %v1227_v46  ;;  %vm1545_vm9 = vmor %vm529_vm15, %vm530_vm4 }
 0x123   : > { %v527_v9 = vsub.f32 1.5, %v526_v23  ;;  %v486_v11 = vmul.f32 0.5, %v485_v12  ;;  %v457_v31 = vmul.f32 %v423_v3, %v1227_v46  ;;  %v689_v22 = vadd.f32 %v1475_v63, %v670_v30 }
 0x124   : > { %v587_v25 = vsub.f32 1.5, %v586_v10  ;;  %v671_v21 = vmul.f32 %v1447_v43, %v652_v60  ;;  %v656_v2 = vmul.f32 %v622_v37, %v1251_v4  ;;  %v502_v27 = vsel %vm1503_vm5, %v1393_v56, %v1486_v8  ;;  %v1517_v17 = vpop.eup %1040 }
 0x125   : > { %v487_v36 = vsub.f32 1.5, %v486_v11  ;;  %v1515_v15 = vadd.f32 1e-05, %v453_v14  ;;  %v1520_v40 = vmul.f32 %v1432_v35, %v527_v9  ;;  %vm590_vm6 = vweird.f32 %v1449_v48  ;;  %v1526_v4 = vpop.eup %1042 }
 0x126   : > { %vm490_vm7 = vweird.f32 %v1454_v53  ;;  %v1524_v19 = vadd.f32 1e-05, %v457_v31  ;;  %v594_v41 = vmul.f32 %v1517_v17, %v1442_v42  ;;  %v1532_v49 = vadd.f32 1e-05, %v465_v38  ;;  %v1534_v50 = vpop.eup %1044  ;;  %vm1574_vm14 = vmor %vm589_vm1, %vm590_vm6 }
 0x127   : > { %v488_v18 = vmul.f32 %v1454_v53, %v487_v36  ;;  %1046 = vrsqrt.f32 %v1515_v15  ;;  %v588_v16 = vmul.f32 %v1449_v48, %v587_v25  ;;  %vm599_vm8 = vweird.f32 %v1442_v42  ;;  %vm1563_vm12 = vmor %vm489_vm3, %vm490_vm7 }
 0x128   : > { %v634_v52 = vmul.f32 %v1526_v4, %v1452_v24  ;;  %v690_v39 = vadd.f32 %v1475_v63, %v671_v21  ;;  %v595_v23 = vmul.f32 %v1517_v17, %v594_v41  ;;  %vm639_vm10 = vweird.f32 %v1452_v24 }
 0x129   : > { %v534_v54 = vmul.f32 %v1534_v50, %v1461_v26  ;;  %vm539_vm11 = vweird.f32 %v1461_v26  ;;  %v675_v60 = vmul.f32 %v1447_v43, %v656_v2  ;;  %v532_v55 = vsel %vm1545_vm9, %v1432_v35, %v1520_v40  ;;  %v426_v3 = vpop.xlane.xlu1 %425  ;;  %v414_v12 = vpop.xlane.xlu2 %413 }
 0x12a   : > { %vm600_vm13 = vweird.f32 %v1517_v17  ;;  %v635_v34 = vmul.f32 %v1526_v4, %v634_v52  ;;  %1048 = vrsqrt.f32 %v1524_v19  ;;  %v492_v62 = vsel %vm1563_vm12, %v1454_v53, %v488_v18 }
 0x12b   : > { %v596_v30 = vmul.f32 0.5, %v595_v23  ;;  %v535_v6 = vmul.f32 %v1534_v50, %v534_v54  ;;  %1050 = vrsqrt.f32 %v1532_v49  ;;  %v592_v13 = vsel %vm1574_vm14, %v1449_v48, %v588_v16  ;;  %vm1604_vm1 = vmor %vm599_vm8, %vm600_vm13 }
 0x12c   : > { %v636_v37 = vmul.f32 0.5, %v635_v34  ;;  %v701_v61 = vpack.c.bf16 %v690_v39, %v689_v22  ;;  %v693_v9 = vadd.f32 %v1475_v63, %v674_v1  ;;  %v694_v53 = vadd.f32 %v1475_v63, %v675_v60 }
 0x12d   : > { %v1587_v10 = vpop.eup %1046  ;;  %v597_v11 = vsub.f32 1.5, %v596_v30  ;;  %v536_v14 = vmul.f32 0.5, %v535_v6  ;;  %v458_v31 = vmul.f32 %v426_v3, %v1227_v46  ;;  %v643_v25 = vmul.f32 %v492_v62, %v1269_v0 }
 0x12e   : > { %v637_v38 = vsub.f32 1.5, %v636_v37  ;;  %v504_v21 = vmul.f32 %v1587_v10, %v1515_v15  ;;  %939 = vmatmul.msk.bf16.vlgmr.msra.gmra.mxu2 %vm299_vm0, %v701_v61  ;;  %v454_v48 = vmul.f32 %v414_v12, %v1227_v46  ;;  %vm540_vm15 = vweird.f32 %v1534_v50 }
 0x12f   : > { %v598_v1 = vmul.f32 %v1517_v17, %v597_v11  ;;  %v537_v22 = vsub.f32 1.5, %v536_v14  ;;  %v703_v2 = vpack.c.bf16 %v694_v53, %v693_v9  ;;  %vm640_vm2 = vweird.f32 %v1526_v4  ;;  %vm541_vm3 = vmor %vm539_vm11, %vm540_vm15 }
 0x130   : > { %v1598_v36 = vpop.eup %1048  ;;  %v638_v40 = vmul.f32 %v1526_v4, %v637_v38  ;;  %v505_v46 = vmul.f32 %v1587_v10, %v504_v21  ;;  %v1611_v18 = vadd.f32 1e-05, %v458_v31  ;;  %v1620_v39 = vadd.f32 1e-05, %v454_v48  ;;  %vm1643_vm4 = vmor %vm639_vm10, %vm640_vm2 }
 0x131   : > { %v1051_v41 = vpop.eup %1050  ;;  %v602_v16 = vsel %vm1604_vm1, %v1517_v17, %v598_v1  ;;  %v538_v52 = vmul.f32 %v1534_v50, %v537_v22  ;;  %v544_v42 = vmul.f32 %v1598_v36, %v1524_v19  ;;  %941 = vmatmul.msk.bf16.vlgmr.msra.gmra.mxu3 %vm299_vm0, %v703_v2  ;;  %v644_v51 = vmul.f32 %v502_v27, %v1259_v7 }
 0x132   : > { %v647_v23 = vmul.f32 %v532_v55, %v1279_v5  ;;  %v624_v17 = vmul.f32 %v1051_v41, %v1532_v49  ;;  %v662_v54 = vmul.f32 %v1447_v43, %v643_v25  ;;  %v653_v60 = vmul.f32 %v592_v13, %v1285_v28 }
 0x133   : > { %v654_v32 = vmul.f32 %v602_v16, %v1305_v44  ;;  %v542_v20 = vsel %vm541_vm3, %v1534_v50, %v538_v52  ;;  %v545_v56 = vmul.f32 %v1598_v36, %v544_v42  ;;  %v506_v26 = vmul.f32 0.5, %v505_v46 }
 0x134   : > { %v648_v5 = vmul.f32 %v542_v20, %v1289_v29  ;;  %v625_v8 = vmul.f32 %v1051_v41, %v624_v17  ;;  %1052 = vrsqrt.f32 %v1611_v18  ;;  %v642_v28 = vsel %vm1643_vm4, %v1526_v4, %v638_v40 }
 0x135   : > { %v546_v44 = vmul.f32 0.5, %v545_v56  ;;  %vm549_vm5 = vweird.f32 %v1524_v19  ;;  %1054 = vrsqrt.f32 %v1620_v39  ;;  %vm630_vm6 = vweird.f32 %v1051_v41 }
 0x136   : > { %v626_v24 = vmul.f32 0.5, %v625_v8  ;;  %v663_v27 = vmul.f32 %v1447_v43, %v644_v51  ;;  %v681_v50 = vadd.f32 %v1475_v63, %v662_v54  ;;  %v666_v55 = vmul.f32 %v1447_v43, %v647_v23 }
 0x137   : > { %v547_v29 = vsub.f32 1.5, %v546_v44  ;;  %v667_v34 = vmul.f32 %v1447_v43, %v648_v5  ;;  %v672_v3 = vmul.f32 %v1447_v43, %v653_v60  ;;  %v507_v35 = vsub.f32 1.5, %v506_v26 }
 0x138   : > { %v627_v4 = vsub.f32 1.5, %v626_v24  ;;  %v682_v62 = vadd.f32 %v1475_v63, %v663_v27  ;;  %v673_v30 = vmul.f32 %v1447_v43, %v654_v32  ;;  %v658_v6 = vmul.f32 %v642_v28, %v1309_v45 }
 0x139   : > { %vm629_vm7 = vweird.f32 %v1532_v49  ;;  %v685_v12 = vadd.f32 %v1475_v63, %v666_v55  ;;  %v686_v13 = vadd.f32 %v1475_v63, %v667_v34  ;;  %vm550_vm8 = vweird.f32 %v1598_v36 }
 0x13a   : > { %v1053_v37 = vpop.eup %1052  ;;  %v628_v61 = vmul.f32 %v1051_v41, %v627_v4  ;;  %v697_v9 = vpack.c.bf16 %v682_v62, %v681_v50  ;;  %v692_v11 = vadd.f32 %v1475_v63, %v673_v30  ;;  %v548_v53 = vmul.f32 %v1598_v36, %v547_v29  ;;  %vm631_vm9 = vmor %vm629_vm7, %vm630_vm6 }
 0x13b   : > { %v1055_v14 = vpop.eup %1054  ;;  %v554_v45 = vmul.f32 %v1053_v37, %v1611_v18  ;;  %v699_v31 = vpack.c.bf16 %v686_v13, %v685_v12  ;;  %v691_v49 = vadd.f32 %v1475_v63, %v672_v3  ;;  %v508_v25 = vmul.f32 %v1587_v10, %v507_v35  ;;  %vm551_vm12 = vmor %vm549_vm5, %vm550_vm8 }
 0x13c   : > { %vm510_vm10 = vweird.f32 %v1587_v10  ;;  %v632_v38 = vsel %vm631_vm9, %v1051_v41, %v628_v61  ;;  %v514_v21 = vmul.f32 %v1055_v14, %v1620_v39  ;;  %935 = vmatmul.msk.bf16.vlgmr.msra.gmra.mxu0 %vm299_vm0, %v697_v9  ;;  %v677_v2 = vmul.f32 %v1447_v43, %v658_v6 }
 0x13d   : > { %v657_v48 = vmul.f32 %v632_v38, %v1313_v47  ;;  %v555_v1 = vmul.f32 %v1053_v37, %v554_v45  ;;  %937 = vmatmul.msk.bf16.vlgmr.msra.gmra.mxu1 %vm299_vm0, %v699_v31  ;;  %v702_v22 = vpack.c.bf16 %v692_v11, %v691_v49  ;;  %vm509_vm11 = vweird.f32 %v1515_v15 }
 0x13e   : > { %v515_v0 = vmul.f32 %v1055_v14, %v514_v21  ;;  %vm511_vm13 = vmor %vm509_vm11, %vm510_vm10  ;;  %v552_v40 = vsel %vm551_vm12, %v1598_v36, %v548_v53  ;;  %vm560_vm14 = vweird.f32 %v1053_v37  ;;  %v696_v42 = vadd.f32 %v1475_v63, %v677_v2 }
 0x13f   : > { %v556_v46 = vmul.f32 0.5, %v555_v1  ;;  %940 = vmatmul.msk.bf16.gmra.mxu2 %vm299_vm0, %v702_v22  ;;  %v676_v47 = vmul.f32 %v1447_v43, %v657_v48  ;;  %v512_v41 = vsel %vm511_vm13, %v1587_v10, %v508_v25  ;;  %v649_v19 = vmul.f32 %v552_v40, %v1333_v58 }
 0x140   : > { %v516_v16 = vmul.f32 0.5, %v515_v0  ;;  %vm520_vm15 = vweird.f32 %v1055_v14  ;;  %v645_v36 = vmul.f32 %v512_v41, %v1329_v57  ;;  %vm559_vm1 = vweird.f32 %v1611_v18 }
 0x141   : > { %v557_v52 = vsub.f32 1.5, %v556_v46  ;;  %v695_v15 = vadd.f32 %v1475_v63, %v676_v47  ;;  %vm561_vm2 = vmor %vm559_vm1, %vm560_vm14  ;;  %vm519_vm3 = vweird.f32 %v1620_v39  ;;  %v668_v58 = vmul.f32 %v1447_v43, %v649_v19 }
 0x142   : > { %v517_v51 = vsub.f32 1.5, %v516_v16  ;;  %vm521_vm4 = vmor %vm519_vm3, %vm520_vm15  ;;  %v664_v20 = vmul.f32 %v1447_v43, %v645_v36  ;;  %vm814_vm5 = vcmask 781312  }
 0x143   : > { %v558_v23 = vmul.f32 %v1053_v37, %v557_v52  ;;  %v704_v17 = vpack.c.bf16 %v696_v42, %v695_v15  ;;  %v687_v39 = vadd.f32 %v1475_v63, %v668_v58 }
 0x144   : > { %v518_v54 = vmul.f32 %v1055_v14, %v517_v51  ;;  %v683_v5 = vadd.f32 %v1475_v63, %v664_v20 }
 0x145   : > { %v562_v10 = vsel %vm561_vm2, %v1053_v37, %v558_v23  ;;  %942 = vmatmul.msk.bf16.gmra.mxu3 %vm299_vm0, %v704_v17 }
 0x146   : > { %v650_v60 = vmul.f32 %v562_v10, %v1351_v33  ;;  %v522_v32 = vsel %vm521_vm4, %v1055_v14, %v518_v54 }
 0x147   : > { %v646_v57 = vmul.f32 %v522_v32, %v1337_v59  ;;  %v1021_v59 = vld [vmem:[%s1759_s2] ss:$0 sm:$0xff] }
 0x148   : > { %v669_v18 = vmul.f32 %v1447_v43, %v650_v60 }
 0x149   : > { %v665_v56 = vmul.f32 %v1447_v43, %v646_v57 }
 0x14a   : > { %v688_v7 = vadd.f32 %v1475_v63, %v669_v18 }
 0x14b   : > { %v684_v33 = vadd.f32 %v1475_v63, %v665_v56 }
 0x14c   : > { %v700_v26 = vpack.c.bf16 %v688_v7, %v687_v39 }
 0x14d   : > { %v698_v8 = vpack.c.bf16 %v684_v33, %v683_v5 }
 0x14e   : > { %938 = vmatmul.msk.bf16.gmra.mxu1 %vm299_vm0, %v700_v26 }
 0x14f   : > { %936 = vmatmul.msk.bf16.gmra.mxu0 %vm299_vm0, %v698_v8 }
 0x1b1   : > { %v778_v28 = vpop.f32.mrf.mxu2 }
 0x1b2   : > { %v779_v43 = vadd.f32 %v1021_v59, %v778_v28 }
 0x1b4   : > { %v806_v63 = vpack.c.bf16 %v779_v43, %v779_v43  ;;  %v788_v44 = vpop.f32.mrf.mxu3 }
 0x1b5   : > { %v789_v24 = vadd.f32 %v1021_v59, %v788_v44 }
 0x1b6   : > { %823 = vst.msk [vmem:[%s1714_s13 + $0x20] sm:$0xf] %vm814_vm5, %v806_v63 }
 0x1b7   : > { %v810_v27 = vpack.c.bf16 %v789_v24, %v789_v24 }
 0x1b9   : > { %827 = vst.msk [vmem:[%s1714_s13 + $0x30] sm:$0xf] %vm814_vm5, %v810_v27  ;;  %v758_v50 = vpop.f32.mrf.mxu0  ;;  %v780_v29 = vpop.f32.mrf.mxu2 }
 0x1ba   : > { %v759_v55 = vadd.f32 %v1021_v59, %v758_v50  ;;  %v781_v34 = vadd.f32 %v1021_v59, %v780_v29  ;;  %v768_v3 = vpop.f32.mrf.mxu1 }
 0x1bb   : > { %v769_v35 = vadd.f32 %v1021_v59, %v768_v3 }
 0x1bc   : > { %v798_v4 = vpack.c.bf16 %v759_v55, %v759_v55  ;;  %v807_v62 = vpack.c.bf16 %v781_v34, %v781_v34  ;;  %v790_v30 = vpop.f32.mrf.mxu3 }
 0x1bd   : > { %v791_v6 = vadd.f32 %v1021_v59, %v790_v30  ;;  %v802_v12 = vpack.c.bf16 %v769_v35, %v769_v35 }
 0x1be   : > { %815 = vst.msk [vmem:[%s1714_s13] sm:$0xf] %vm814_vm5, %v798_v4 }
 0x1bf   : > { %824 = vst.msk [vmem:[%s1714_s13 + $0x24] sm:$0xf] %vm814_vm5, %v807_v62  ;;  %v811_v13 = vpack.c.bf16 %v791_v6, %v791_v6 }
 0x1c0   : > { %819 = vst.msk [vmem:[%s1714_s13 + $0x10] sm:$0xf] %vm814_vm5, %v802_v12 }
 0x1c1   : > { %828 = vst.msk [vmem:[%s1714_s13 + $0x34] sm:$0xf] %vm814_vm5, %v811_v13  ;;  %v760_v37 = vpop.f32.mrf.mxu0 }
 0x1c2   : > { %v761_v61 = vadd.f32 %v1021_v59, %v760_v37  ;;  %v783_v9 = vpop.f32.mrf.mxu2  ;;  %v770_v11 = vpop.f32.mrf.mxu1 }
 0x1c3   : > { %v784_v14 = vadd.f32 %v1021_v59, %v783_v9  ;;  %v771_v53 = vadd.f32 %v1021_v59, %v770_v11 }
 0x1c4   : > { %v799_v45 = vpack.c.bf16 %v761_v61, %v761_v61 }
 0x1c5   : > { %v808_v31 = vpack.c.bf16 %v784_v14, %v784_v14  ;;  %v803_v49 = vpack.c.bf16 %v771_v53, %v771_v53 }
 0x1c6   : > { %816 = vst.msk [vmem:[%s1714_s13 + $0x4] sm:$0xf] %vm814_vm5, %v799_v45 }
 0x1c7   : > { %825 = vst.msk [vmem:[%s1714_s13 + $0x28] sm:$0xf] %vm814_vm5, %v808_v31 }
 0x1c8   : > { %820 = vst.msk [vmem:[%s1714_s13 + $0x14] sm:$0xf] %vm814_vm5, %v803_v49  ;;  %v793_v25 = vpop.f32.mrf.mxu3 }
 0x1c9   : > { %v794_v38 = vadd.f32 %v1021_v59, %v793_v25 }
 0x1ca   : > { %v785_v21 = vpop.f32.mrf.mxu2 }
 0x1cb   : > { %v786_v48 = vadd.f32 %v1021_v59, %v785_v21  ;;  %v812_v1 = vpack.c.bf16 %v794_v38, %v794_v38  ;;  %v773_v22 = vpop.f32.mrf.mxu1 }
 0x1cc   : > { %v763_v2 = vpop.f32.mrf.mxu0  ;;  %v774_v0 = vadd.f32 %v1021_v59, %v773_v22 }
 0x1cd   : > { %v809_v40 = vpack.c.bf16 %v786_v48, %v786_v48  ;;  %829 = vst.msk [vmem:[%s1714_s13 + $0x38] sm:$0xf] %vm814_vm5, %v812_v1  ;;  %v764_v46 = vadd.f32 %v1021_v59, %v763_v2 }
 0x1ce   : > { %v804_v47 = vpack.c.bf16 %v774_v0, %v774_v0 }
 0x1cf   : > { %826 = vst.msk [vmem:[%s1714_s13 + $0x2c] sm:$0xf] %vm814_vm5, %v809_v40  ;;  %v800_v41 = vpack.c.bf16 %v764_v46, %v764_v46 }
 0x1d0   : > { %821 = vst.msk [vmem:[%s1714_s13 + $0x18] sm:$0xf] %vm814_vm5, %v804_v47  ;;  %v795_v16 = vpop.f32.mrf.mxu3 }
 0x1d1   : > { %817 = vst.msk [vmem:[%s1714_s13 + $0x8] sm:$0xf] %vm814_vm5, %v800_v41  ;;  %v796_v52 = vadd.f32 %v1021_v59, %v795_v16 }
 0x1d3   : > { %v813_v15 = vpack.c.bf16 %v796_v52, %v796_v52  ;;  %v775_v42 = vpop.f32.mrf.mxu1 }
 0x1d4   : > { %v765_v19 = vpop.f32.mrf.mxu0  ;;  %v776_v51 = vadd.f32 %v1021_v59, %v775_v42 }
 0x1d5   : > { %830 = vst.msk [vmem:[%s1714_s13 + $0x3c] sm:$0xf] %vm814_vm5, %v813_v15  ;;  %v766_v36 = vadd.f32 %v1021_v59, %v765_v19 }
 0x1d6   : > { %v805_v23 = vpack.c.bf16 %v776_v51, %v776_v51 }
 0x1d7   : > { %v801_v17 = vpack.c.bf16 %v766_v36, %v766_v36 }
 0x1d8   : > { %822 = vst.msk [vmem:[%s1714_s13 + $0x1c] sm:$0xf] %vm814_vm5, %v805_v23 }
 0x1d9   : > { %818 = vst.msk [vmem:[%s1714_s13 + $0xc] sm:$0xf] %vm814_vm5, %v801_v17 }
 0x1da PF: > { %s15_s20 = sadd.s32 1, %s1078_s20   ;;  %s1781_s18 = smov %s1074_s19 }
 0x1db   : > { %p12_p5 = scmp.ge.s32.totalorder %s15_s20, 4   ;;  %s1782_s19 = smov %s1784_s21 }
 0x1dd   :  { %14 = sbr.rel (!%p12_p5) target bundleno = 2 (0x2), region = 70 }

</bundles_post_ra>
